<compile_context>
chip_gen: v7x
topology: tpu7x:2x2x1
jax: 0.10.0
libtpu: 0.0.40
codegen_flags: <defaults>
</compile_context>

<pallas_src>
import functools

import jax
import jax.numpy as jnp
from jax.experimental import pallas as pl
from jax.experimental.pallas import tpu as pltpu

N_EMBD = 384          # n_embd in the PyTorch module
BLOCK_SIZE = 256      # max sequence length (tril buffer size) — T must be <= this
LANE = 128            # TPU lane width; each q/k/v panel is padded to this


def head_kernel(x_ref, wqkv_ref, o_ref, qkv_ref, *, block_b):
    # x_ref:    (Bb, T, C)       input dtype (f32 here), cast to bf16 in-kernel
    # wqkv_ref: (C, 3*LANE)      bf16 panels [Wq*scale | 0 | Wk | 0 | Wv | 0]
    # o_ref:    (Bb, T, LANE)    f32 (lanes >= head_size are zero)
    # qkv_ref:  (Bb, T, 3*LANE)  bf16 VMEM scratch
    Bb, T, C = x_ref.shape
    NP = wqkv_ref.shape[1]

    # Fused q/k/v projection for all rows of this step: one wide MXU pass,
    # f32 accumulation, bf16 result parked in VMEM scratch.
    x = x_ref[...].reshape(Bb * T, C).astype(jnp.bfloat16)
    qkv = jnp.dot(x, wqkv_ref[...], preferred_element_type=jnp.float32)
    qkv_ref[...] = qkv.reshape(Bb, T, NP).astype(jnp.bfloat16)

    # Causal mask indices (shared by all rows of this grid step).
    row = jax.lax.broadcasted_iota(jnp.int32, (T, T), 0)
    col = jax.lax.broadcasted_iota(jnp.int32, (T, T), 1)
    causal = row >= col

    def attend_one_row(b, carry):
        qkv_b = qkv_ref[b]                          # (T, 3*LANE) bf16
        q = qkv_b[:, 0 * LANE:1 * LANE]             # (T, 128), scale pre-folded
        k = qkv_b[:, 1 * LANE:2 * LANE]
        v = qkv_b[:, 2 * LANE:3 * LANE]             # zero-padded past head_size

        # attention scores: contract the 128-lane dim directly (zero pad
        # contributes 0), no explicit k transpose materialized
        s = jax.lax.dot_general(
            q, k, (((1,), (1,)), ((), ())),
            preferred_element_type=jnp.float32)     # (T, T) f32

        # causal mask: future positions -> -inf
        s = jnp.where(causal, s, -jnp.inf)

        # numerically stable softmax; normalization deferred past PV matmul
        # (all element-wise math stays f32: v5e has no bf16 VPU/EUP)
        s = s - jnp.max(s, axis=-1, keepdims=True)
        p = jnp.exp(s)
        l = jnp.sum(p, axis=-1, keepdims=True)      # (T, 1)

        out = jnp.dot(p.astype(jnp.bfloat16), v,
                      preferred_element_type=jnp.float32)   # (T, 128)
        out = out * pl.reciprocal(l, approx=True)

        # dropout: identity (inference mode)
        o_ref[b] = out.astype(o_ref.dtype)          # lane-dense unmasked store
        return carry

    jax.lax.fori_loop(0, block_b, attend_one_row, None, unroll=True)


def _pick_batch_block(B, max_bb=8):
    """Rows per grid step: amortize per-step overhead, keep >=2 parallel steps."""
    if B <= 1:
        return 1
    bb = min(max_bb, max(1, B // 2))
    while B % bb:
        bb -= 1
    return bb


def head_forward(x, w_key, w_query, w_value):
    """x: (B, T, C) float32.  w_*: (head_size, C) as in nn.Linear.weight."""
    B, T, C = x.shape
    H = w_key.shape[0]
    assert C == N_EMBD and T <= BLOCK_SIZE and H <= LANE

    # 128-lane-aligned fused weight panels [Wq*scale | 0 | Wk | 0 | Wv | 0].
    # The PyTorch code scales scores by C**-0.5 (n_embd, not head_size) —
    # reproduced exactly by folding it into the query panel.
    scale = C ** -0.5

    def panel(w, s=1.0):
        return jnp.pad(w.T * s, ((0, 0), (0, LANE - H)))      # (C, 128)

    wqkv_bf = jnp.concatenate(
        [panel(w_query, scale), panel(w_key), panel(w_value)],
        axis=1).astype(jnp.bfloat16)                           # (C, 384)
    NP = wqkv_bf.shape[1]

    Bb = _pick_batch_block(B)
    kernel = functools.partial(head_kernel, block_b=Bb)

    out = pl.pallas_call(
        kernel,
        out_shape=jax.ShapeDtypeStruct((B, T, LANE), jnp.float32),
        grid_spec=pltpu.PrefetchScalarGridSpec(
            num_scalar_prefetch=0,
            grid=(B // Bb,),
            in_specs=[
                pl.BlockSpec((Bb, T, C), lambda b: (b, 0, 0)),   # x, original dtype
                # constant block index -> fused weight stays resident in VMEM
                pl.BlockSpec((C, NP), lambda b: (0, 0)),
            ],
            out_specs=pl.BlockSpec((Bb, T, LANE), lambda b: (b, 0, 0)),
            scratch_shapes=[pltpu.VMEM((Bb, T, NP), jnp.bfloat16)],
        ),
        compiler_params=pltpu.CompilerParams(
            dimension_semantics=("parallel",),
            # Explicit budget: double-buffered x/out blocks + weight + scratch
            # at Bb=8, T=256 is ~12 MiB, well inside v7x's 64 MiB physical.
            vmem_limit_bytes=32 * 1024 * 1024,
        ),
    )(x, wqkv_bf)

    return out[:, :, :H]   # drop the zero lane padding


def head_reference(x, w_key, w_query, w_value):
    """Pure-JAX f32 reference mirroring the PyTorch forward (eval mode)."""
    B, T, C = x.shape
    k = x @ w_key.T
    q = x @ w_query.T
    v = x @ w_value.T
    wei = (q @ jnp.swapaxes(k, -2, -1)) * (C ** -0.5)
    mask = jnp.tril(jnp.ones((T, T), dtype=bool))
    wei = jnp.where(mask, wei, -jnp.inf)
    wei = jax.nn.softmax(wei, axis=-1)
    return wei @ v


if __name__ == "__main__":
    key = jax.random.PRNGKey(0)
    kx, kk, kq, kv = jax.random.split(key, 4)

    B, T, C = 2, 16, N_EMBD
    head_size = 64

    x = jax.random.normal(kx, (B, T, C), dtype=jnp.float32)
    # deterministic "Linear(n_embd, head_size, bias=False)" weights: (H, C)
    bound = 1.0 / (C ** 0.5)
    w_key = jax.random.uniform(kk, (head_size, C), jnp.float32, -bound, bound)
    w_query = jax.random.uniform(kq, (head_size, C), jnp.float32, -bound, bound)
    w_value = jax.random.uniform(kv, (head_size, C), jnp.float32, -bound, bound)

    out = head_forward(x, w_key, w_query, w_value)
    out = jax.block_until_ready(out)

    ref = head_reference(x, w_key, w_query, w_value)
    assert out.shape == (B, T, head_size)
    # bf16 MXU operands + approximate reciprocal -> looser tolerance than pure f32
    assert jnp.allclose(out, ref, atol=3e-2, rtol=3e-2), \
        float(jnp.max(jnp.abs(out - ref)))

    print("KERNEL_OK")
</pallas_src>

<mosaic_0001>
module attributes {stable_mosaic.version = 11 : i64} {
  func.func @head_kernel(%arg0: i32, %arg1: memref<1x16x384xf32, #tpu.memory_space<vmem>>, %arg2: memref<384x384xbf16, #tpu.memory_space<vmem>>, %arg3: memref<1x16x128xf32, #tpu.memory_space<vmem>>, %arg4: memref<1x16x384xbf16, #tpu.memory_space<vmem>>) attributes {dimension_semantics = [#tpu.dimension_semantics<parallel>], iteration_bounds = array<i64: 2>, scalar_prefetch = 0 : i64, scratch_operands = 1 : i64, tpu.core_type = #tpu.core_type<tc>, window_params = [{transform_indices = @transform_0, window_bounds = array<i64: 1, 16, 384>}, {pipeline_mode = #tpu.pipeline_mode<synchronous>, transform_indices = @transform_1, window_bounds = array<i64: 384, 384>}, {transform_indices = @transform_2, window_bounds = array<i64: 1, 16, 128>}]} {
    %c0 = arith.constant 0 : index
    %c0_0 = arith.constant 0 : index
    %c0_1 = arith.constant 0 : index
    %0 = vector.load %arg1[%c0, %c0_0, %c0_1] : memref<1x16x384xf32, #tpu.memory_space<vmem>>, vector<1x16x384xf32>
    %1 = vector.shape_cast %0 : vector<1x16x384xf32> to vector<16x384xf32>
    %2 = arith.truncf %1 : vector<16x384xf32> to vector<16x384xbf16>
    %c0_2 = arith.constant 0 : index
    %c0_3 = arith.constant 0 : index
    %3 = vector.load %arg2[%c0_2, %c0_3] : memref<384x384xbf16, #tpu.memory_space<vmem>>, vector<384x384xbf16>
    %cst = arith.constant dense<0.000000e+00> : vector<16x384xf32>
    %4 = tpu.matmul %2, %3, %cst {dimension_numbers = #tpu.dot_dimension_numbers<[1], [0], [0], [1], [0, 0, 1, 1], [], []>} : vector<16x384xbf16>, vector<384x384xbf16>, vector<16x384xf32> -> vector<16x384xf32>
    %5 = vector.shape_cast %4 : vector<16x384xf32> to vector<1x16x384xf32>
    %6 = arith.truncf %5 : vector<1x16x384xf32> to vector<1x16x384xbf16>
    %c0_4 = arith.constant 0 : index
    %c0_5 = arith.constant 0 : index
    %c0_6 = arith.constant 0 : index
    %7 = vector.load %arg4[%c0_4, %c0_5, %c0_6] : memref<1x16x384xbf16, #tpu.memory_space<vmem>>, vector<1x16x384xbf16>
    tpu.vector_store %arg4[%c0_4, %c0_5, %c0_6], %6 {strides = array<i32>} : memref<1x16x384xbf16, #tpu.memory_space<vmem>>, vector<1x16x384xbf16>,
    %8 = tpu.iota {dimensions = array<i32: 0>} : vector<16x16xi32>
    %9 = tpu.iota {dimensions = array<i32: 1>} : vector<16x16xi32>
    %10 = arith.cmpi sge, %8, %9 : vector<16x16xi32>
    %c0_i32 = arith.constant 0 : i32
    %11 = arith.index_cast %c0_i32 : i32 to index
    %c0_7 = arith.constant 0 : index
    %c0_8 = arith.constant 0 : index
    %12 = vector.load %arg4[%11, %c0_7, %c0_8] : memref<1x16x384xbf16, #tpu.memory_space<vmem>>, vector<1x16x384xbf16>
    %13 = vector.shape_cast %12 : vector<1x16x384xbf16> to vector<16x384xbf16>
    %14 = vector.extract_strided_slice %13 {offsets = [0, 0], sizes = [16, 128], strides = [1, 1]} : vector<16x384xbf16> to vector<16x128xbf16>
    %15 = vector.extract_strided_slice %13 {offsets = [0, 128], sizes = [16, 128], strides = [1, 1]} : vector<16x384xbf16> to vector<16x128xbf16>
    %16 = vector.extract_strided_slice %13 {offsets = [0, 256], sizes = [16, 128], strides = [1, 1]} : vector<16x384xbf16> to vector<16x128xbf16>
    %cst_9 = arith.constant dense<0.000000e+00> : vector<16x16xf32>
    %17 = tpu.matmul %14, %15, %cst_9 {dimension_numbers = #tpu.dot_dimension_numbers<[1], [1], [0], [0], [0, 0, 1, 0], [], []>} : vector<16x128xbf16>, vector<16x128xbf16>, vector<16x16xf32> -> vector<16x16xf32>
    %cst_10 = arith.constant 0xFF800000 : f32
    %18 = vector.broadcast %cst_10 : f32 to vector<16x16xf32>
    %19 = arith.select %10, %17, %18 : vector<16x16xi1>, vector<16x16xf32>
    %cst_11 = arith.constant dense<0xFF800000> : vector<16xf32>
    %20 = vector.multi_reduction <maximumf>, %19, %cst_11 [1] : vector<16x16xf32> to vector<16xf32>
    %21 = vector.shape_cast %20 : vector<16xf32> to vector<16x1xf32>
    %22 = vector.broadcast %21 : vector<16x1xf32> to vector<16x16xf32>
    %23 = arith.subf %19, %22 : vector<16x16xf32>
    %24 = math.exp %23 : vector<16x16xf32>
    %cst_12 = arith.constant dense<0.000000e+00> : vector<16xf32>
    %25 = vector.multi_reduction <add>, %24, %cst_12 [1] : vector<16x16xf32> to vector<16xf32>
    %26 = vector.shape_cast %25 : vector<16xf32> to vector<16x1xf32>
    %27 = arith.truncf %24 : vector<16x16xf32> to vector<16x16xbf16>
    %cst_13 = arith.constant dense<0.000000e+00> : vector<16x128xf32>
    %28 = tpu.matmul %27, %16, %cst_13 {dimension_numbers = #tpu.dot_dimension_numbers<[1], [0], [0], [1], [0, 0, 1, 1], [], []>} : vector<16x16xbf16>, vector<16x128xbf16>, vector<16x128xf32> -> vector<16x128xf32>
    %29 = tpu.reciprocal %26 {approx = true} : vector<16x1xf32> -> vector<16x1xf32>
    %30 = vector.broadcast %29 : vector<16x1xf32> to vector<16x128xf32>
    %31 = arith.mulf %28, %30 : vector<16x128xf32>
    %32 = arith.index_cast %c0_i32 : i32 to index
    %c0_14 = arith.constant 0 : index
    %c0_15 = arith.constant 0 : index
    %33 = vector.load %arg3[%32, %c0_14, %c0_15] : memref<1x16x128xf32, #tpu.memory_space<vmem>>, vector<1x16x128xf32>
    %34 = vector.shape_cast %33 : vector<1x16x128xf32> to vector<16x128xf32>
    %35 = vector.shape_cast %31 : vector<16x128xf32> to vector<1x16x128xf32>
    tpu.vector_store %arg3[%32, %c0_14, %c0_15], %35 {strides = array<i32>} : memref<1x16x128xf32, #tpu.memory_space<vmem>>, vector<1x16x128xf32>,
    %c1_i32 = arith.constant 1 : i32
    return
  }
  func.func @transform_0(%arg0: i32) -> (i32, i32, i32) {
    %c0_i32 = arith.constant 0 : i32
    %c0_i32_0 = arith.constant 0 : i32
    %c0_i32_1 = arith.constant 0 : i32
    return %arg0, %c0_i32, %c0_i32_0 : i32, i32, i32
  }
  func.func @transform_1(%arg0: i32) -> (i32, i32) {
    %c0_i32 = arith.constant 0 : i32
    %c0_i32_0 = arith.constant 0 : i32
    %c0_i32_1 = arith.constant 0 : i32
    return %c0_i32, %c0_i32_0 : i32, i32
  }
  func.func @transform_2(%arg0: i32) -> (i32, i32, i32) {
    %c0_i32 = arith.constant 0 : i32
    %c0_i32_0 = arith.constant 0 : i32
    %c0_i32_1 = arith.constant 0 : i32
    return %arg0, %c0_i32, %c0_i32_0 : i32, i32, i32
  }
}

</mosaic_0001>

<bundles_post_ra>
// kernel: tpu_custom_call.1
= control target key start
LH: loop header
LB: loop body
LE: loop exit
PB: predicated region body
PF: predicated region fallthrough
CT: control target
= control target key end

     0   :  { %7 = vsyncpa [#allocation4], 0  ;;  %s1780_s0 = inlined_call_operand.hbm [shape: f32[2,16,384], index: 0, kind: input, shape index: {}]   ;;  %s1781_s1 = inlined_call_operand.hbm [shape: bf16[384,384], index: 1, kind: input, shape index: {}]   ;;  %s1782_s2 = inlined_call_operand.hbm [shape: f32[2,16,128], index: 2, kind: output, shape index: {}]  }
   0x1   :  { %9 = vsyncpa [#allocation4 + $0x1], 0 }
   0x2   :  { %10 = vsyncpa [#allocation7], 0 }
   0x3   :  { %11 = vsyncpa [#allocation5], 0 }
   0x4   :  { %13 = vsyncpa [#allocation5 + $0x1], 0  ;;  %s1549_s9 = smov 0   ;;  %s1551_s10 = smov 0  }
   0x5   :  { %s1553_s11 = smov 0   ;;  %s1555_s12 = smov 0  }
   0x6 LB: > { %s1570_s13 = sadd.s32 4294967295, %s1520_s12   ;;  %s1061_s14 = sadd.s32 4294967294, %s1520_s12   ;;  %s1520_s12 = sphi %s1555_s12, %s1802_s12   ;;  %s1516_s11 = sphi %s1553_s11, %s1801_s11   ;;  %s1512_s10 = sphi %s1551_s10, %s1800_s10   ;;  %s1508_s9 = sphi %s1549_s9, %s1799_s9  }
   0x7   : > { %p39_p0 = scmp.ne.s32.totalorder %s1512_s10, %s1508_s9  ;;  %p1783_p1 = scmp.eq.s32.totalorder %s1570_s13, 0 }
   0x8   : > { %p90_p3 = scmp.eq.s32.totalorder %s1061_s14, 1  ;;  %p1062_p5 = scmp.ge.s32.totalorder %s1520_s12, 1 }
   0x9   : > { %p1579_p4 = por %p1783_p1, %p39_p0  ;;  %p97_p7 = scmp.lt.s32.totalorder %s1520_s12, 3 }
   0xa   : > { %p1584_p6 = por %p90_p3, %p39_p0  ;;  %s1522_s18 = smov [#allocation6]  }
   0xb   : > { %s1786_s15 = scalar_select %p1579_p4, 1, 0 }
   0xc   : > { %s1787_s16 = scalar_select %p1584_p6, 1, 0 }
   0xd   : > { %p1589_p8 = pnand %p1062_p5, %p97_p7  ;;  %s109_s19 = sshll.u32 %s1522_s18, 4  ;;  %s1593_s19 = int_to_ptr.vmem [resolvable:$true] %s109_s19 }
   0xe   : > { %s1605_s21 = sadd.s32 1, %s1520_s12   ;;  %s26_s22 = sadd.s32 1, %s1516_s11 }
   0xf   : > { %s1788_s17 = scalar_select %p1589_p8, 1, 0 }
  0x10   : > { %p1230_p9 = pneg %p1589_p8  ;;  %s23_s23 = ssub.s32 %s1520_s12, %s1605_s21 }
  0x11   : > { %s1392_s26 = scalar_lea.hbm %s1781_s1, 9216 }
  0x12   : > { %p1600_p11 = pnand %p1230_p9, %p1783_p1  ;;  %p1393_p12 = scmp.ne.s32.totalorder %s1781_s1, %s1392_s26 }
  0x13   : > { %p1399_p5 = scmp.lt.u32.totalorder %s1392_s26, %s1781_s1 }
  0x14   : > { %p1394_p13 = pneg %p1600_p11 }
  0x16   : > { %p1395_p0 = pnand %p1394_p13, %p1393_p12 }
  0x18   : > { %p1396_p3 = pneg %p1395_p0 }
  0x1a   : > { %p1401_p7 = pnand %p1399_p5, %p1396_p3 }
  0x1c   : > { %1404 = shalt.err (!%p1401_p7)
}
  0x1d   : > { %s1405_s3 = scalar_lea.vmem %s1593_s19, 9216  ;;  %p1413_p2 = scmp.lt.s32.totalorder %s1593_s19, %s1593_s19 }
  0x1e   : > { %p1406_p9 = scmp.ne.s32.totalorder %s1593_s19, %s1405_s3  ;;  %p1414_p6 = scmp.lt.s32.totalorder %s1405_s3, %s1405_s3 }
  0x20   : > { %p1408_p10 = pnand %p1406_p9, %p1394_p13  ;;  %p1415_p4 = por %p1414_p6, %p1413_p2 }
  0x22   : > { %p1409_p1 = pneg %p1408_p10 }
  0x24   : > { %p1416_p8 = pnand %p1415_p4, %p1409_p1 }
  0x26   : > { %1419 = shalt.err (!%p1416_p8)
}
  0x27   : > { %s1523_s4 = smov 192   ;;  %s1524_s5 = smov 12  }
  0x28   : > { %1233 = dma.hbm_to_vmem [thread:$0]  (!%p1600_p11), %s1781_s1, 9216, %s1593_s19, [#allocation7], %s1523_s4, %s1523_s4, %s1524_s5  }
  0x29   : > { %p24_p2 = scmp.eq.s32.totalorder %s23_s23, 0  ;;  %p33_p1 = scmp.ne.s32.totalorder %s1516_s11, %s1512_s10 }
  0x2a   : > { %p34_p4 = scmp.eq.s32.totalorder %s1520_s12, 0  ;;  %p1243_p6 = scmp.lt.s32.totalorder %s1520_s12, 2 }
  0x2b   : > { %s1636_s8 = scalar_select %p24_p2, %s1516_s11, %s26_s22  }
  0x2c   : > { %p35_p8 = por %p34_p4, %p33_p1  ;;  %p1790_p10 = scmp.eq.s32.totalorder %s1570_s13, 1 }
  0x2d   : > { %s123_s18 = sand.u32 1, %s1516_s11   ;;  %s1220_s24 = smul.u32 768, %s1520_s12 }
  0x2e   : > { %p1640_p12 = por %p1790_p10, %p33_p1  ;;  %s1219_s25 = smul.u32 48, %s123_s18 }
  0x2f   : > { %s1649_s27 = scalar_lea.hbm %s1780_s0, %s1220_s24  ;;  %p1651_p11 = pnand %p1243_p6, %p35_p8 }
  0x30   : > { %s127_s22 = scalar_lea.vmem [#allocation3], %s1219_s25  ;;  %s1657_s28 = scalar_lea.sflag [#allocation4], %s123_s18 }
  0x31   : > { %s134_s23 = sshll.u32 %s127_s22, 4  ;;  %s1420_s29 = scalar_lea.hbm %s1649_s27, 768  ;;  %s1655_s23 = int_to_ptr.vmem [resolvable:$true] %s134_s23 }
  0x32   : > { %p1421_p13 = scmp.ne.s32.totalorder %s1649_s27, %s1420_s29  ;;  %p1422_p0 = pneg %p1651_p11 }
  0x33   : > { %s1425_s4 = scalar_lea.hbm %s1780_s0, 1536  ;;  %p1426_p7 = scmp.lt.u32.totalorder %s1649_s27, %s1780_s0 }
  0x34   : > { %p1423_p3 = pnand %p1422_p0, %p1421_p13  ;;  %p1427_p9 = scmp.lt.u32.totalorder %s1425_s4, %s1420_s29 }
  0x35   : > { %p1429_p1 = scmp.lt.u32.totalorder %s1420_s29, %s1649_s27 }
  0x36   : > { %p1424_p5 = pneg %p1423_p3  ;;  %p1428_p2 = por %p1427_p9, %p1426_p7 }
  0x38   : > { %p1430_p4 = por %p1429_p1, %p1428_p2 }
  0x3a   : > { %p1431_p6 = pnand %p1430_p4, %p1424_p5 }
  0x3c   : > { %1434 = shalt.err (!%p1431_p6)
}
  0x3d   : > { %s1435_s7 = scalar_lea.vmem %s1655_s23, 768  ;;  %s1525_s18 = smov [#allocation3]  }
  0x3e   : > { %p1436_p8 = scmp.ne.s32.totalorder %s1655_s23, %s1435_s7  ;;  %s1440_s24 = sshll.u32 %s1525_s18, 4  ;;  %s1441_s24 = int_to_ptr.vmem [resolvable:$false] %s1440_s24 }
  0x3f   : > { %s1442_s25 = scalar_lea.vmem %s1441_s24, 1536  ;;  %p1443_p3 = scmp.lt.s32.totalorder %s1655_s23, %s1441_s24 }
  0x40   : > { %p1438_p10 = pnand %p1436_p8, %p1422_p0  ;;  %p1444_p7 = scmp.lt.s32.totalorder %s1442_s25, %s1435_s7 }
  0x42   : > { %p1439_p13 = pneg %p1438_p10  ;;  %p1445_p9 = por %p1444_p7, %p1443_p3 }
  0x44   : > { %p1446_p2 = pnand %p1445_p9, %p1439_p13 }
  0x46   : > { %1449 = shalt.err (!%p1446_p2)
}
  0x47   : > { %s1526_s20 = smov 384   ;;  %s1527_s26 = smov 24  }
  0x48   : > { %1237 = dma.hbm_to_vmem [thread:$0]  (!%p1651_p11), %s1649_s27, 768, %s1655_s23, %s1657_s28, %s1526_s20, %s1526_s20, %s1527_s26  }
  0x49   : > { %p1793_p0 = scmp.ne.s32.totalorder %s1788_s17, 0 }
  0x4a   : > { %s1688_s22 = sand.u32 (!%p1793_p0), 1, %s1512_s10   ;;  %p1794_p5 = scmp.ne.s32.totalorder (!%p1793_p0), %s1786_s15, 0 }
  0x4b   : > { %146 = sbr.rel (%p1793_p0) target bundleno = 1015 (0x3f7), region = 28  ;;  %s149_s30 = scalar_lea.sflag (!%p1793_p0), [#allocation4], %s1688_s22 }
  0x4c   : > { %s1221_s29 = smul.u32 (!%p1793_p0), 48, %s1688_s22 }
  0x4e   : > { %s1692_s3 = scalar_lea.vmem (!%p1793_p0), [#allocation3], %s1221_s29 }
  0x52   : > { %1495 = dma.done.wait (%p1794_p5), %s149_s30, 768  }
  0x53   : > { %1497 = vsyncadd (%p1794_p5), %s149_s30, 4294966528  ;;  %p1795_p11 = scmp.eq.s32.totalorder %s1570_s13, 0 }
  0x55   : > { %1499 = dma.done.wait (%p1795_p11), [#allocation7], 9216   ;;  %p1796_p1 = pmov %p1795_p11 }
  0x56   : > { %v1288_v0 = vld [vmem:[#allocation6 + $0x4] ss:$12 sps:$4 sm:$0xff]   ;;  %v1290_v1 = vld [vmem:[#allocation6] ss:$12 sps:$4 sm:$0xff]   ;;  %v1291_v2 = vld [vmem:[#allocation6 + $0x1c] ss:$12 sps:$4 sm:$0xff]  }
  0x57   : > { %1501 = vsyncadd (%p1796_p1), [#allocation7], 4294958080  ;;  %667 = vmatprep.subr.bf16.mxu0 %v1288_v0  ;;  %v1293_v3 = vld [vmem:[#allocation6 + $0x18] ss:$12 sps:$4 sm:$0xff]   ;;  %v1294_v4 = vld [vmem:[#allocation6 + $0x34] ss:$12 sps:$4 sm:$0xff]  }
  0x58   : > { %668 = vmatpush1.bf16.msra.mxu0 %v1290_v1  ;;  %v1296_v5 = vld [vmem:[#allocation6 + $0x30] ss:$12 sps:$4 sm:$0xff]   ;;  %v1297_v6 = vld [vmem:[#allocation6 + $0x4c] ss:$12 sps:$4 sm:$0xff]   ;;  %v1299_v7 = vld [vmem:[#allocation6 + $0x48] ss:$12 sps:$4 sm:$0xff]  }
  0x59   : > { %669 = vmatprep.subr.bf16.mxu0 %v1291_v2  ;;  %v1300_v8 = vld [vmem:[#allocation6 + $0x64] ss:$12 sps:$4 sm:$0xff]   ;;  %v1302_v9 = vld [vmem:[#allocation6 + $0x60] ss:$12 sps:$4 sm:$0xff]   ;;  %v1303_v10 = vld [vmem:[#allocation6 + $0x7c] ss:$12 sps:$4 sm:$0xff]  }
  0x5a   : > { %v1305_v11 = vld [vmem:[#allocation6 + $0x78] ss:$12 sps:$4 sm:$0xff]   ;;  %v1306_v12 = vld [vmem:[#allocation6 + $0x94] ss:$12 sps:$4 sm:$0xff]   ;;  %v1308_v16 = vld [vmem:[#allocation6 + $0x90] ss:$12 sps:$4 sm:$0xff]  }
  0x5b   : > { %v179_v13 = vld [vmem:[%s1692_s3 + $0x8] sm:$0xff]  ;;  %v182_v14 = vld [vmem:[%s1692_s3 + $0x20] sm:$0xff]  ;;  %v181_v51 = vld [vmem:[%s1692_s3 + $0x18] sm:$0xff]  ;;  %v1528_v58 = vmov 0.0   ;;  %v1529_v60 = vmov 0   ;;  %vm1530_vm0 = vmmov 0  }
  0x5c   : > { %670 = vmatpush1.bf16.msra.mxu0 %v1293_v3  ;;  %v185_v15 = vpack.c.bf16 %v182_v14, %v179_v13  ;;  %v1309_v17 = vld [vmem:[#allocation6 + $0xac] ss:$12 sps:$4 sm:$0xff]   ;;  %v1311_v18 = vld [vmem:[#allocation6 + $0xa8] ss:$12 sps:$4 sm:$0xff]   ;;  %v1312_v19 = vld [vmem:[#allocation6 + $0xc4] ss:$12 sps:$4 sm:$0xff]  }
  0x5d   : > { %671 = vmatprep.subr.bf16.mxu0 %v1294_v4  ;;  %v1314_v20 = vld [vmem:[#allocation6 + $0xc0] ss:$12 sps:$4 sm:$0xff]   ;;  %v1315_v21 = vld [vmem:[#allocation6 + $0xdc] ss:$12 sps:$4 sm:$0xff]   ;;  %v1317_v22 = vld [vmem:[#allocation6 + $0xd8] ss:$12 sps:$4 sm:$0xff]  }
  0x5e   : > { %699 = vmatprep.mubr.bf16.mxu0 %v185_v15  ;;  %785 = vmatprep.mubr.bf16.mxu1 %v185_v15  ;;  %v1318_v23 = vld [vmem:[#allocation6 + $0xf4] ss:$12 sps:$4 sm:$0xff]   ;;  %v1364_v28 = vld [vmem:[#allocation6 + $0xf8] ss:$12 sps:$4 sm:$0xff]   ;;  %v1320_v29 = vld [vmem:[#allocation6 + $0xf0] ss:$12 sps:$4 sm:$0xff]  }
  0x5f   : > { %v1360_v24 = vld [vmem:[#allocation6 + $0xc8] ss:$12 sps:$4 sm:$0xff]   ;;  %v1362_v26 = vld [vmem:[#allocation6 + $0xe0] ss:$12 sps:$4 sm:$0xff]   ;;  %v1365_v31 = vld [vmem:[#allocation6 + $0x38] ss:$12 sps:$4 sm:$0xff]  }
  0x60   : > { %672 = vmatpush1.bf16.msra.mxu0 %v1296_v5  ;;  %v1361_v25 = vld [vmem:[#allocation6 + $0x8] ss:$12 sps:$4 sm:$0xff]   ;;  %1148 = vmatprep.subr.bf16.mxu1 %v1360_v24  ;;  %v1363_v27 = vld [vmem:[#allocation6 + $0x20] ss:$12 sps:$4 sm:$0xff]   ;;  %v1366_v32 = vld [vmem:[#allocation6 + $0x110] ss:$12 sps:$4 sm:$0xff]  }
  0x61   : > { %673 = vmatprep.subr.bf16.mxu0 %v1297_v6  ;;  %1149 = vmatpush3.bf16.msra.mxu1 %v1361_v25  ;;  %v1321_v30 = vld [vmem:[#allocation6 + $0x10c] ss:$12 sps:$4 sm:$0xff]   ;;  %v1323_v33 = vld [vmem:[#allocation6 + $0x108] ss:$12 sps:$4 sm:$0xff]   ;;  %v1324_v34 = vld [vmem:[#allocation6 + $0x124] ss:$12 sps:$4 sm:$0xff]  }
  0x62   : > { %1150 = vmatprep.subr.bf16.mxu1 %v1362_v26  ;;  %v1367_v35 = vld [vmem:[#allocation6 + $0x50] ss:$12 sps:$4 sm:$0xff]   ;;  %v1368_v36 = vld [vmem:[#allocation6 + $0x128] ss:$12 sps:$4 sm:$0xff]   ;;  %v1326_v37 = vld [vmem:[#allocation6 + $0x120] ss:$12 sps:$4 sm:$0xff]  }
  0x63   : > { %v1327_v38 = vld [vmem:[#allocation6 + $0x13c] ss:$12 sps:$4 sm:$0xff]   ;;  %v1370_v40 = vld [vmem:[#allocation6 + $0x140] ss:$12 sps:$4 sm:$0xff]   ;;  %v1329_v41 = vld [vmem:[#allocation6 + $0x138] ss:$12 sps:$4 sm:$0xff]  }
  0x64   : > { %674 = vmatpush1.bf16.msra.mxu0 %v1299_v7  ;;  %v1369_v39 = vld [vmem:[#allocation6 + $0x68] ss:$12 sps:$4 sm:$0xff]   ;;  %v1371_v43 = vld [vmem:[#allocation6 + $0x80] ss:$12 sps:$4 sm:$0xff]   ;;  %v1372_v44 = vld [vmem:[#allocation6 + $0x158] ss:$12 sps:$4 sm:$0xff]  }
  0x65   : > { %675 = vmatprep.subr.bf16.mxu0 %v1300_v8  ;;  %1151 = vmatpush3.bf16.msra.mxu1 %v1363_v27  ;;  %v1330_v42 = vld [vmem:[#allocation6 + $0x154] ss:$12 sps:$4 sm:$0xff]   ;;  %v1332_v45 = vld [vmem:[#allocation6 + $0x150] ss:$12 sps:$4 sm:$0xff]   ;;  %v1333_v46 = vld [vmem:[#allocation6 + $0x16c] ss:$12 sps:$4 sm:$0xff]  }
  0x66   : > { %1152 = vmatprep.subr.bf16.mxu1 %v1364_v28  ;;  %v1373_v47 = vld [vmem:[#allocation6 + $0x98] ss:$12 sps:$4 sm:$0xff]   ;;  %v1374_v48 = vld [vmem:[#allocation6 + $0x170] ss:$12 sps:$4 sm:$0xff]   ;;  %v1335_v49 = vld [vmem:[#allocation6 + $0x168] ss:$12 sps:$4 sm:$0xff]  }
  0x67   : > { %v178_v50 = vld [vmem:[%s1692_s3] sm:$0xff]  ;;  %v1341_v56 = vld [vmem:[#allocation6 + $0x19c] ss:$12 sps:$4 sm:$0xff]   ;;  %v1347_v0 = vld [vmem:[#allocation6 + $0x1cc] ss:$12 sps:$4 sm:$0xff]   ;;  %vm894_vm2 = vcmask 130048  }
  0x68   : > { %676 = vmatpush1.bf16.msra.mxu0 %v1302_v9  ;;  %v1338_v52 = vld [vmem:[#allocation6 + $0x184] ss:$12 sps:$4 sm:$0xff]   ;;  %v184_v54 = vpack.c.bf16 %v181_v51, %v178_v50  ;;  %v1336_v55 = vld [vmem:[#allocation6 + $0x180] ss:$12 sps:$4 sm:$0xff]   ;;  %v1376_v57 = vld [vmem:[#allocation6 + $0x188] ss:$12 sps:$4 sm:$0xff]  }
  0x69   : > { %677 = vmatprep.subr.bf16.mxu0 %v1303_v10  ;;  %1153 = vmatpush3.bf16.msra.mxu1 %v1365_v31  ;;  %v1375_v53 = vld [vmem:[#allocation6 + $0xb0] ss:$12 sps:$4 sm:$0xff]   ;;  %v1339_v59 = vld [vmem:[#allocation6 + $0x198] ss:$12 sps:$4 sm:$0xff]   ;;  %v1344_v61 = vld [vmem:[#allocation6 + $0x1b4] ss:$12 sps:$4 sm:$0xff]  }
  0x6a   : > { %1154 = vmatprep.subr.bf16.mxu1 %v1366_v32  ;;  %v1377_v62 = vld [vmem:[#allocation6 + $0x1a0] ss:$12 sps:$4 sm:$0xff]   ;;  %v1342_v63 = vld [vmem:[#allocation6 + $0x1b0] ss:$12 sps:$4 sm:$0xff]   ;;  %v1378_v1 = vld [vmem:[#allocation6 + $0x1b8] ss:$12 sps:$4 sm:$0xff]  }
  0x6b   : > { %v1345_v2 = vld [vmem:[#allocation6 + $0x1c8] ss:$12 sps:$4 sm:$0xff]   ;;  %v1350_v3 = vld [vmem:[#allocation6 + $0x1e4] ss:$12 sps:$4 sm:$0xff]   ;;  %v1348_v5 = vld [vmem:[#allocation6 + $0x1e0] ss:$12 sps:$4 sm:$0xff]  }
  0x6c   : > { %678 = vmatpush1.bf16.msra.mxu0 %v1305_v11  ;;  %v1379_v4 = vld [vmem:[#allocation6 + $0x1d0] ss:$12 sps:$4 sm:$0xff]   ;;  %v1380_v7 = vld [vmem:[#allocation6 + $0x1e8] ss:$12 sps:$4 sm:$0xff]   ;;  %v1351_v8 = vld [vmem:[#allocation6 + $0x1f8] ss:$12 sps:$4 sm:$0xff]  }
  0x6d   : > { %679 = vmatprep.subr.bf16.mxu0 %v1306_v12  ;;  %1155 = vmatpush3.bf16.msra.mxu1 %v1367_v35  ;;  %v1353_v6 = vld [vmem:[#allocation6 + $0x1fc] ss:$12 sps:$4 sm:$0xff]   ;;  %v1356_v9 = vld [vmem:[#allocation6 + $0x214] ss:$12 sps:$4 sm:$0xff]   ;;  %v1359_v12 = vld [vmem:[#allocation6 + $0x22c] ss:$12 sps:$4 sm:$0xff]  }
  0x6e   : > { %1156 = vmatprep.subr.bf16.mxu1 %v1368_v36  ;;  %v1381_v10 = vld [vmem:[#allocation6 + $0x200] ss:$12 sps:$4 sm:$0xff]   ;;  %v1354_v11 = vld [vmem:[#allocation6 + $0x210] ss:$12 sps:$4 sm:$0xff]   ;;  %v1382_v13 = vld [vmem:[#allocation6 + $0x218] ss:$12 sps:$4 sm:$0xff]  }
  0x6f   : > { %v1357_v14 = vld [vmem:[#allocation6 + $0x228] ss:$12 sps:$4 sm:$0xff]   ;;  %s1068_s15 = sshll.u32 %s1688_s22, 4  ;;  %s1147_s19 = sshll.u32 %s1570_s13, 8 }
  0x70   : > { %680 = vmatpush1.bf16.msra.mxu0 %v1308_v16  ;;  %v180_v15 = vld [vmem:[%s1692_s3 + $0x10] sm:$0xff]  ;;  %v183_v16 = vld [vmem:[%s1692_s3 + $0x28] sm:$0xff]  ;;  %s176_s17 = scalar_lea.vmem [#allocation8], %s1068_s15  ;;  %s1736_s4 = scalar_lea.hbm %s1782_s2, %s1147_s19 }
  0x71   : > { %681 = vmatprep.subr.bf16.mxu0 %v1309_v17  ;;  %1157 = vmatpush3.bf16.msra.mxu1 %v1369_v39  ;;  %v1383_v17 = vld [vmem:[#allocation6 + $0x230] ss:$12 sps:$4 sm:$0xff]   ;;  %s978_s27 = sshll.u32 %s176_s17, 4  ;;  %s965_s13 = scalar_lea.sflag [#allocation5], %s1688_s22  ;;  %s1731_s27 = int_to_ptr.vmem [resolvable:$true] %s978_s27 }
  0x72   : > { %1158 = vmatprep.subr.bf16.mxu1 %v1370_v40  ;;  %s1450_s5 = scalar_lea.vmem %s1731_s27, 256  ;;  %s1531_s6 = smov [#allocation8]  }
  0x73   : > { %p1451_p4 = scmp.ne.s32.totalorder %s1731_s27, %s1450_s5  ;;  %s1454_s7 = sshll.u32 %s1531_s6, 4  ;;  %s1455_s7 = int_to_ptr.vmem [resolvable:$false] %s1454_s7 }
  0x74   : > { %682 = vmatpush1.bf16.msra.mxu0 %v1311_v18  ;;  %v186_v18 = vpack.c.bf16 %v183_v16, %v180_v15  ;;  %s1456_s18 = scalar_lea.vmem %s1455_s7, 512  ;;  %p1457_p10 = scmp.lt.s32.totalorder %s1731_s27, %s1455_s7 }
  0x75   : > { %683 = vmatprep.subr.bf16.mxu0 %v1312_v19  ;;  %1159 = vmatpush3.bf16.msra.mxu1 %v1371_v43  ;;  %p1452_p6 = pnand %p1451_p4, %p1640_p12  ;;  %p1458_p13 = scmp.lt.s32.totalorder %s1456_s18, %s1450_s5 }
  0x76   : > { %1160 = vmatprep.subr.bf16.mxu1 %v1372_v44 }
  0x77   : > { %p1453_p8 = pneg %p1452_p6  ;;  %p1459_p3 = por %p1458_p13, %p1457_p10 }
  0x78   : > { %684 = vmatpush1.bf16.msra.mxu0 %v1314_v20 }
  0x79   : > { %685 = vmatprep.subr.bf16.mxu0 %v1315_v21  ;;  %1161 = vmatpush3.bf16.msra.mxu1 %v1373_v47  ;;  %p1460_p7 = pnand %p1459_p3, %p1453_p8 }
  0x7a   : > { %1162 = vmatprep.subr.bf16.mxu1 %v1374_v48 }
  0x7c   : > { %686 = vmatpush1.bf16.msra.mxu0 %v1317_v22 }
  0x7d   : > { %687 = vmatprep.subr.bf16.mxu0 %v1318_v23  ;;  %1163 = vmatpush3.bf16.msra.mxu1 %v1375_v53 }
  0x7e   : > { %1183 = vmatprep.subr.bf16.mxu1 %v1528_v58 }
  0x80   : > { %688 = vmatpush1.bf16.msra.mxu0 %v1320_v29  ;;  %786 = vmatmul.mubr.bf16.vlgmr.msra.gmra.mrb[0].mxu1 %v184_v54 }
  0x81   : > { %689 = vmatprep.subr.bf16.mxu0 %v1321_v30  ;;  %1184 = vmatpush3.bf16.msra.mxu1 %v1376_v57 }
  0x82   : > { %1199 = vmatprep.mubr.msk.bf16.mxu1 %vm1530_vm0, %v1528_v58  ;;  %1185 = vmatprep.subr.bf16.mxu1 %v1528_v58 }
  0x84   : > { %690 = vmatpush1.bf16.msra.mxu0 %v1323_v33 }
  0x85   : > { %691 = vmatprep.subr.bf16.mxu0 %v1324_v34  ;;  %1186 = vmatpush3.bf16.msra.mxu1 %v1377_v62 }
  0x86   : > { %1187 = vmatprep.subr.bf16.mxu1 %v1528_v58 }
  0x88   : > { %692 = vmatpush1.bf16.msra.mxu0 %v1326_v37 }
  0x89   : > { %693 = vmatprep.subr.bf16.mxu0 %v1327_v38  ;;  %1188 = vmatpush3.bf16.msra.mxu1 %v1378_v1  ;;  %v841_v38 = vlaneseq }
  0x8a   : > { %1189 = vmatprep.subr.bf16.mxu1 %v1528_v58 }
  0x8b   : > { %v842_v39 = vshrl.u32 %v841_v38, 7  ;;  %v845_v40 = vand.u32 127, %v841_v38 }
  0x8c   : > { %694 = vmatpush1.bf16.msra.mxu0 %v1329_v41 }
  0x8d   : > { %695 = vmatprep.subr.bf16.mxu0 %v1330_v42  ;;  %1190 = vmatpush3.bf16.msra.mxu1 %v1379_v4  ;;  %v843_v41 = vadd.s32 8, %v842_v39  ;;  %vm846_vm1 = vcmp.ge.s32.totalorder %v842_v39, %v845_v40 }
  0x8e   : > { %1191 = vmatprep.subr.bf16.mxu1 %v1528_v58 }
  0x8f   : > { %vm847_vm3 = vcmp.ge.s32.totalorder %v843_v41, %v845_v40 }
  0x90   : > { %696 = vmatpush1.bf16.msra.mxu0 %v1332_v45 }
  0x91   : > { %697 = vmatprep.subr.bf16.mxu0 %v1333_v46  ;;  %1192 = vmatpush3.bf16.msra.mxu1 %v1380_v7 }
  0x92   : > { %1193 = vmatprep.subr.bf16.mxu1 %v1528_v58 }
  0x94   : > { %698 = vmatpush1.bf16.msra.mxu0 %v1335_v49 }
  0x95   : > { %710 = vmatprep.subr.bf16.mxu0 %v1338_v52  ;;  %1194 = vmatpush3.bf16.msra.mxu1 %v1381_v10 }
  0x96   : > { %1195 = vmatprep.subr.bf16.mxu1 %v1528_v58 }
  0x97   : > { %700 = vmatmul.mubr.bf16.vlgmr.msra.gmra.mrb[0].mxu0 %v184_v54 }
  0x98   : > { %711 = vmatpush1.bf16.msra.mxu0 %v1336_v55  ;;  %742 = vmatprep.mubr.bf16.mxu0 %v1529_v60 }
  0x99   : > { %712 = vmatprep.subr.bf16.mxu0 %v1341_v56  ;;  %1196 = vmatpush3.bf16.msra.mxu1 %v1382_v13 }
  0x9a   : > { %1197 = vmatprep.subr.bf16.mxu1 %v1528_v58 }
  0x9c   : > { %713 = vmatpush1.bf16.msra.mxu0 %v1339_v59 }
  0x9d   : > { %714 = vmatprep.subr.bf16.mxu0 %v1344_v61  ;;  %1198 = vmatpush3.bf16.msra.mxu1 %v1383_v17 }
  0x9e   : > { %1203 = vmatprep.subr.bf16.mxu1 %v1528_v58 }
  0xa0   : > { %715 = vmatpush1.bf16.msra.mxu0 %v1342_v63  ;;  %1200 = vmatmul.mubr.bf16.vlgmr.msra.gmra.mrb[4].mxu1 %v186_v18 }
  0xa1   : > { %716 = vmatprep.subr.bf16.mxu0 %v1347_v0  ;;  %1205 = vmatprep.mubr.msk.bf16.mxu1 %vm1530_vm0, %v1528_v58 }
  0xa4   : > { %717 = vmatpush1.bf16.msra.mxu0 %v1345_v2 }
  0xa5   : > { %718 = vmatprep.subr.bf16.mxu0 %v1350_v3 }
  0xa8   : > { %719 = vmatpush1.bf16.msra.mxu0 %v1348_v5 }
  0xa9   : > { %720 = vmatprep.subr.bf16.mxu0 %v1353_v6 }
  0xac   : > { %721 = vmatpush1.bf16.msra.mxu0 %v1351_v8 }
  0xad   : > { %722 = vmatprep.subr.bf16.mxu0 %v1356_v9 }
  0xb0   : > { %723 = vmatpush1.bf16.msra.mxu0 %v1354_v11 }
  0xb1   : > { %724 = vmatprep.subr.bf16.mxu0 %v1359_v12 }
  0xb4   : > { %725 = vmatpush1.bf16.msra.mxu0 %v1357_v14 }
  0xb7   : > { %743 = vmatmul.mubr.bf16.vlgmr.msra.gmra.mrb[0].mxu0 %v186_v18 }
 0x153   : > { %v1164_v19 = vpop.f32.mrb[0].mxu1 }
 0x154   : > { %v1165_v20 = vpop.f32.mrb[1].mxu1 }
 0x155   : > { %v1166_v21 = vadd.f32 %v1165_v20, %v1164_v19  ;;  %v1167_v22 = vpop.f32.mrb[2].mxu1 }
 0x156   : > { %v1168_v23 = vpop.f32.mrb[3].mxu1 }
 0x157   : > { %v1169_v24 = vadd.f32 %v1168_v23, %v1167_v22 }
 0x173   : > { %v828_v28 = vpop.f32.mrb[4].mxu1 }
 0x174   : > { %v829_v31 = vadd.f32 %v1166_v21, %v828_v28  ;;  %v1201_v32 = vpop.f32.mrb[5].mxu1 }
 0x175   : > { %v831_v34 = vpop.f32.mrb[6].mxu1 }
 0x176   : > { %v832_v35 = vadd.f32 %v1169_v24, %v831_v34  ;;  %v1202_v36 = vpop.f32.mrb[7].mxu1 }
 0x178   : > { %v837_v37 = vpack.c.bf16 %v832_v35, %v829_v31 }
 0x18a   : > { %v744_v25 = vpop.f32.mrb[0].mxu0 }
 0x18b   : > { %v746_v26 = vpop.f32.mrb[1].mxu0 }
 0x18c   : > { %v748_v27 = vpop.f32.mrb[2].mxu0 }
 0x18d   : > { %v835_v29 = vpack.c.bf16 %v748_v27, %v744_v25  ;;  %v750_v30 = vpop.f32.mrb[3].mxu0 }
 0x18e   : > { %v836_v33 = vpack.c.bf16 %v750_v30, %v746_v26 }
 0x190   : > { %1204 = vmatpush3.bf16.xpose.msra.mxu1 %v836_v33 }
 0x191   : > { %1209 = vmatprep.subr.bf16.mxu1 %v1528_v58 }
 0x197   : > { %1206 = vmatmul.mubr.bf16.vlgmr.msra.gmra.mrb[8].mxu1 %v835_v29 }
 0x198   : > { %1210 = vmatpush3.bf16.msra.mxu1 %v837_v37  ;;  %1211 = vmatprep.mubr.msk.bf16.mxu1 %vm1530_vm0, %v1528_v58 }
 0x26a   : > { %v885_v42 = vpop.f32.mrb[8].mxu1 }
 0x26b   : > { %v892_v43 = vsel %vm846_vm1, %v885_v42, -inf  ;;  %v1207_v44 = vpop.f32.mrb[9].mxu1 }
 0x26c   : > { %v888_v45 = vpop.f32.mrb[10].mxu1  ;;  %v895_v46 = vsel %vm894_vm2, %v892_v43, -inf }
 0x26d   : > { %v893_v47 = vsel %vm847_vm3, %v888_v45, -inf  ;;  %896 = vmax.xlane.f32.xlu0 %v895_v46  ;;  %v1208_v48 = vpop.f32.mrb[11].mxu1 }
 0x26e   : > { %v898_v49 = vsel %vm894_vm2, %v893_v47, -inf }
 0x271   : > { %899 = vmax.xlane.f32.xlu0 %v898_v49 }
 0x2fa   : > { %v897_v50 = vpop.xlane.xlu0 %896 }
 0x2fb   : > { %v901_v51 = vsub.f32 %v892_v43, %v897_v50 }
 0x2fd   : > { %v903_v52 = vmul.f32 1.442695, %v901_v51 }
 0x2fe   : > { %v900_v53 = vpop.xlane.xlu0 %899 }
 0x2ff   : > { %1384 = vpow2.f32 %v903_v52  ;;  %v902_v54 = vsub.f32 %v893_v47, %v900_v53 }
 0x301   : > { %v905_v55 = vmul.f32 1.442695, %v902_v54 }
 0x303   : > { %1386 = vpow2.f32 %v905_v55 }
 0x309   : > { %v1385_v56 = vpop.eup %1384 }
 0x30a   : > { %v907_v57 = vsel %vm894_vm2, %v1385_v56, 0.0 }
 0x30b   : > { %908 = vadd.xlane.f32.xlu1 %v907_v57 }
 0x30d   : > { %v1387_v58 = vpop.eup %1386 }
 0x30e   : > { %v910_v59 = vsel %vm894_vm2, %v1387_v58, 0.0  ;;  %v913_v60 = vpack.c.bf16 %v1387_v58, %v1385_v56 }
 0x30f   : > { %911 = vadd.xlane.f32.xlu1 %v910_v59 }
 0x310   : > { %1212 = vmatmul.mubr.msk.bf16.vlgmr.msra.gmra.mrb[12].mxu1 %vm894_vm2, %v913_v60 }
 0x398   : > { %v909_v61 = vpop.xlane.xlu1 %908 }
 0x399   : > { %1388 = vrcp.f32 %v909_v61 }
 0x39c   : > { %v912_v62 = vpop.xlane.xlu1 %911 }
 0x39d   : > { %1390 = vrcp.f32 %v912_v62 }
 0x3a3   : > { %v1389_v63 = vpop.eup %1388 }
 0x3a7   : > { %v1391_v3 = vpop.eup %1390 }
 0x3e3   : > { %v951_v0 = vpop.f32.mrb[12].mxu1 }
 0x3e4   : > { %v960_v1 = vmul.f32 %v1389_v63, %v951_v0  ;;  %v1213_v2 = vpop.f32.mrb[13].mxu1 }
 0x3e5   : > { %v954_v4 = vpop.f32.mrb[14].mxu1 }
 0x3e6   : > { %962 = vst [vmem:[%s176_s17] sm:$0xff] %v960_v1  ;;  %v961_v5 = vmul.f32 %v1391_v3, %v954_v4  ;;  %v1214_v6 = vpop.f32.mrb[15].mxu1 }
 0x3e8   : > { %963 = vst [vmem:[%s176_s17 + $0x8] sm:$0xff] %v961_v5 }
 0x3e9   : > { %1463 = shalt.err (!%p1460_p7)
}
 0x3ea   : > { %s1464_s24 = scalar_lea.hbm %s1736_s4, 256  ;;  %s1468_s26 = scalar_lea.hbm %s1782_s2, 512 }
 0x3eb   : > { %p1465_p9 = scmp.ne.s32.totalorder %s1736_s4, %s1464_s24  ;;  %p1469_p5 = scmp.lt.u32.totalorder %s1736_s4, %s1782_s2 }
 0x3ec   : > { %p1470_p11 = scmp.lt.u32.totalorder %s1468_s26, %s1464_s24  ;;  %p1472_p4 = scmp.lt.u32.totalorder %s1464_s24, %s1736_s4 }
 0x3ed   : > { %p1466_p2 = pnand %p1465_p9, %p1640_p12 }
 0x3ee   : > { %p1471_p1 = por %p1470_p11, %p1469_p5 }
 0x3ef   : > { %p1467_p0 = pneg %p1466_p2 }
 0x3f0   : > { %p1473_p6 = por %p1472_p4, %p1471_p1 }
 0x3f2   : > { %p1474_p8 = pnand %p1473_p6, %p1467_p0 }
 0x3f4   : > { %1477 = shalt.err (!%p1474_p8)
}
 0x3f5   : > { %s1532_s3 = smov 128   ;;  %s1533_s15 = smov 8  }
 0x3f6   : > { %1228 = dma.vmem_to_hbm [thread:$0]  (%p1640_p12), %s1731_s27, 256, %s1736_s4, %s965_s13, %s1532_s3, %s1532_s3, %s1533_s15  }
 0x3f7 PF: > { %s993_s17 = sand.u32 1, %s1508_s9   ;;  %p1797_p10 = scmp.ne.s32.totalorder %s1787_s16, 0 }
 0x3f8   : > { %p1798_p13 = scmp.ge.s32.totalorder %s1520_s12, 2  ;;  %s994_s19 = scalar_lea.sflag [#allocation5], %s993_s17 }
 0x3fa   : > { %p1239_p3 = pnand %p1798_p13, %p1797_p10 }
 0x3fc   : > { %1503 = dma.done.wait (!%p1239_p3), %s994_s19, 256  }
 0x3fd   : > { %1505 = vsyncadd (!%p1239_p3), %s994_s19, 4294967040  ;;  %p16_p7 = scmp.ge.s32.totalorder %s1605_s21, 4   ;;  %s1799_s9 = smov %s1512_s10 }
 0x3fe   : > { %s1800_s10 = smov %s1516_s11  ;;  %s1801_s11 = smov %s1636_s8 }
 0x3ff   : > { %s1802_s12 = smov %s1605_s21  ;;  %18 = sbr.rel (!%p16_p7) target bundleno = 6 (0x6), region = 77 }
 0x406   :  { %999 = vsyncpa [#allocation4], 1 }
 0x407   :  { %1001 = vsyncpa [#allocation4 + $0x1], 1 }
 0x408   :  { %1002 = vsyncpa [#allocation7], 1 }
 0x409   :  { %1003 = vsyncpa [#allocation5], 1 }
 0x40a   :  { %1005 = vsyncpa [#allocation5 + $0x1], 1 }

</bundles_post_ra>
